<compile_context>
chip_gen: v7x
topology: tpu7x:2x2x1
jax: 0.10.0
libtpu: 0.0.40
codegen_flags: <defaults>
</compile_context>

<pallas_src>
import jax
import jax.numpy as jnp
import numpy as np
from jax import lax
from jax.experimental import pallas as pl
from jax.experimental.pallas import tpu as pltpu


def decoder_kernel(xc_ref, mcar_ref, wx_ref, wh_ref, b_ref,
                   w1_ref, b1_ref, w2_ref, b2_ref, wl_ref, bl_ref,
                   out_ref, gx_ref, seq_ref):
    T, TB, twoD = xc_ref.shape
    H2 = wh_ref.shape[0]                      # 2H  ( [fwd | bwd] )
    H = H2 // 2
    G = wh_ref.shape[1]                       # 8H  fused gate width
    Cp = out_ref.shape[-1]                    # lane-padded num_classes

    # ---- hoisted input projection: one high-occupancy MXU pass + bias --------
    x_flat = xc_ref[...].reshape(T * TB, twoD)
    gx = jnp.dot(x_flat, wx_ref[...], preferred_element_type=jnp.float32)
    gx = gx + b_ref[...]                      # (1, 8H) broadcast, done once
    gx_ref[...] = gx.reshape(T, TB, G)

    # ---- serial recurrence: only h @ W_h + nonlinearities on the critical path
    def step(s, carry):
        h, c = carry                                           # (TB, 2H) f32
        g = gx_ref[s] + jnp.dot(h, wh_ref[...],
                                preferred_element_type=jnp.float32)
        # fused gate column layout: [i_f,i_b,f_f,f_b,o_f,o_b | g_f,g_b]
        sig = jax.nn.sigmoid(g[:, :6 * H])                     # one wide sigmoid
        gi = sig[:, 0:2 * H]
        gf = sig[:, 2 * H:4 * H]
        go = sig[:, 4 * H:6 * H]
        gg = jnp.tanh(g[:, 6 * H:8 * H])                       # one wide tanh
        c_new = gf * c + gi * gg
        h_new = go * jnp.tanh(c_new)

        # carry gate (precomputed, dense (TB,2H) load). where-select is NaN-safe.
        m = mcar_ref[s] != 0.0
        h = jnp.where(m, h_new, h)
        c = jnp.where(m, c_new, c)

        # raw per-step row stores (pad masking deferred to after the loop)
        seq_ref[pl.ds(s, 1), :, 0:H] = h[:, :H].reshape(1, TB, H)
        seq_ref[pl.ds(T - 1 - s, 1), :, H:] = h[:, H:].reshape(1, TB, H)
        return h, c

    h0 = jnp.zeros((TB, H2), jnp.float32)
    c0 = jnp.zeros((TB, H2), jnp.float32)
    _ = lax.fori_loop(0, T, step, (h0, c0))

    # ---- deferred pad masking + MLP head (dropout == identity in eval) -------
    vout = mcar_ref[:, :, 0:1] != 0.0                          # valid[t, b]
    hcat = jnp.where(vout, seq_ref[...], 0.0).reshape(T * TB, H2)
    z1 = jnp.maximum(
        jnp.dot(hcat, w1_ref[...], preferred_element_type=jnp.float32)
        + b1_ref[...], 0.0)
    z2 = jnp.maximum(
        jnp.dot(z1, w2_ref[...], preferred_element_type=jnp.float32)
        + b2_ref[...], 0.0)
    logits = jnp.dot(z2, wl_ref[...], preferred_element_type=jnp.float32) + bl_ref[...]
    out_ref[...] = logits.reshape(T, TB, Cp)


def _reorder_gates(w, H, direction):
    """Map a PyTorch-order (rows, 4H) [i|f|g|o] weight into the fused 8H column
    layout [i_f,i_b,f_f,f_b,o_f,o_b,g_f,g_b] (zeros in the other direction's cols)."""
    i, f, g, o = w[:, 0:H], w[:, H:2 * H], w[:, 2 * H:3 * H], w[:, 3 * H:4 * H]
    z = jnp.zeros_like(i)
    if direction == "fwd":
        blocks = [i, z, f, z, o, z, g, z]
    else:
        blocks = [z, i, z, f, z, o, z, g]
    return jnp.concatenate(blocks, axis=1)


def decoder_forward(x, seq_lengths, params, *, batch_tile=None, vmem_limit_bytes=None):
    B, T, D = x.shape
    H = params["whh_f"].shape[0]              # n_hid2
    N3 = params["w2"].shape[0]                # n_hid3
    C = params["wl"].shape[1]                 # num_classes
    Cp = 128 * pl.cdiv(C, 128)                # lane-dense output width

    # ---- batch tiling (>= 2 tiles lets v7x's two TensorCores split the grid) -
    if batch_tile is None:
        TB = B // 2 if (B >= 16 and (B // 2) % 8 == 0) else B
    else:
        TB = int(batch_tile)
        if TB < B and TB % 8 != 0:
            TB = 8 * pl.cdiv(TB, 8)           # keep the sublane-tiled batch axis aligned
    Bp = TB * pl.cdiv(B, TB)
    if Bp != B:                               # pad partial last tile (sliced off below)
        x = jnp.concatenate([x, jnp.zeros((Bp - B, T, D), x.dtype)], axis=0)
        seq_lengths = jnp.concatenate(
            [seq_lengths, jnp.zeros((Bp - B,), seq_lengths.dtype)], axis=0)
    nb = Bp // TB

    # ---- one-time glue (plain JAX), time-major layouts -----------------------
    x_tm = jnp.transpose(x, (1, 0, 2)).astype(jnp.float32)           # (T, Bp, D)
    # x_cat[s, b, :D] = x[b, s] (fwd reads t=s); x_cat[s, b, D:] = x[b, T-1-s] (bwd)
    x_cat = jnp.concatenate([x_tm, x_tm[::-1]], axis=-1)             # (T, Bp, 2D)
    valid = (jnp.arange(T)[:, None] < seq_lengths[None, :]).astype(jnp.float32)  # (T, Bp)
    # carry-gate mask: fwd lanes valid at t=s, bwd lanes valid at t=T-1-s
    mcar = jnp.concatenate(
        [jnp.broadcast_to(valid[:, :, None], (T, Bp, H)),
         jnp.broadcast_to(valid[::-1][:, :, None], (T, Bp, H))], axis=-1)  # (T, Bp, 2H)

    # Fused, split weights: W_x (2D,8H) feeds the hoisted projection, W_h (2H,8H)
    # is the only matmul left on the recurrent critical path.
    w_x = jnp.concatenate([_reorder_gates(params["wih_f"], H, "fwd"),
                           _reorder_gates(params["wih_b"], H, "bwd")], axis=0)
    w_h = jnp.concatenate([_reorder_gates(params["whh_f"], H, "fwd"),
                           _reorder_gates(params["whh_b"], H, "bwd")], axis=0)
    b_fused = (_reorder_gates(params["b_f"], H, "fwd")
               + _reorder_gates(params["b_b"], H, "bwd"))             # (1, 8H)

    wl_pad = jnp.zeros((N3, Cp), jnp.float32).at[:, :C].set(params["wl"])
    bl_pad = jnp.zeros((1, Cp), jnp.float32).at[:, :C].set(params["bl"])

    if vmem_limit_bytes is None:
        try:
            cap = int(pltpu.get_tpu_info().vmem_capacity_bytes)       # 64 MiB v7x, 128 MiB v5e/v6e
        except Exception:
            cap = 64 * 1024 * 1024
        vmem_limit_bytes = max(32 * 1024 * 1024,
                               min(cap * 3 // 4, 100 * 1024 * 1024))

    def rep(shape):
        return pl.BlockSpec(shape, lambda i: tuple(0 for _ in shape))

    in_specs = [
        pl.BlockSpec((T, TB, 2 * D), lambda i: (0, i, 0)),      # x_cat (time-major)
        pl.BlockSpec((T, TB, 2 * H), lambda i: (0, i, 0)),      # carry mask
        rep((2 * D, 8 * H)),                                    # W_x
        rep((2 * H, 8 * H)),                                    # W_h
        rep((1, 8 * H)),                                        # fused bias
        rep((2 * H, N3)),                                       # densel1
        rep((1, N3)),
        rep((N3, N3)),                                          # densel2
        rep((1, N3)),
        rep((N3, Cp)),                                          # label (lane-padded)
        rep((1, Cp)),
    ]

    out_tm = pl.pallas_call(
        decoder_kernel,
        out_shape=jax.ShapeDtypeStruct((T, Bp, Cp), jnp.float32),
        grid=(nb,),
        in_specs=in_specs,
        out_specs=pl.BlockSpec((T, TB, Cp), lambda i: (0, i, 0)),
        scratch_shapes=[
            pltpu.VMEM((T, TB, 8 * H), jnp.float32),   # precomputed gate inputs
            pltpu.VMEM((T, TB, 2 * H), jnp.float32),   # [fwd | bwd] LSTM outputs
        ],
        compiler_params=pltpu.CompilerParams(
            dimension_semantics=("parallel",),
            vmem_limit_bytes=vmem_limit_bytes),
    )(x_cat, mcar, w_x, w_h, b_fused,
      params["w1"], params["b1"], params["w2"], params["b2"], wl_pad, bl_pad)

    # wrapper-side layout plumbing: time-major -> batch-major, drop lane padding.
    return jnp.transpose(out_tm, (1, 0, 2))[:B, :, :C]


def init_params(key, in_size, n_hid2, n_hid3, num_classes):
    ks = jax.random.split(key, 14)
    scale = 0.1

    def nrm(k, shape):
        return scale * jax.random.normal(k, shape, jnp.float32)

    H = n_hid2
    p = {}
    # LSTM weights stored PyTorch-style (4H, in) then transposed for x @ W
    p["wih_f"] = nrm(ks[0], (4 * H, in_size)).T
    p["whh_f"] = nrm(ks[1], (4 * H, H)).T
    p["b_f"] = (nrm(ks[2], (4 * H,)) + nrm(ks[3], (4 * H,)))[None, :]   # b_ih + b_hh
    p["wih_b"] = nrm(ks[4], (4 * H, in_size)).T
    p["whh_b"] = nrm(ks[5], (4 * H, H)).T
    p["b_b"] = (nrm(ks[6], (4 * H,)) + nrm(ks[7], (4 * H,)))[None, :]
    # dense layers (PyTorch Linear (out, in), transposed)
    p["w1"] = nrm(ks[8], (n_hid3, 2 * H)).T
    p["b1"] = nrm(ks[9], (n_hid3,))[None, :]
    p["w2"] = nrm(ks[10], (n_hid3, n_hid3)).T
    p["b2"] = nrm(ks[11], (n_hid3,))[None, :]
    p["wl"] = nrm(ks[12], (num_classes, n_hid3)).T
    p["bl"] = nrm(ks[13], (num_classes,))[None, :]
    return p


def ref_forward(x, seq_lengths, p):
    """Pure-JAX reference with exact pack/pad semantics (python loops, tiny sizes)."""
    B, T, D = x.shape
    H = p["whh_f"].shape[0]

    def run_dir(xs, wih_t, whh_t, b):
        h = jnp.zeros((1, H), jnp.float32)
        c = jnp.zeros((1, H), jnp.float32)
        outs = []
        for t in range(xs.shape[0]):
            g = xs[t:t + 1] @ wih_t + h @ whh_t + b
            i = jax.nn.sigmoid(g[:, 0:H]); f = jax.nn.sigmoid(g[:, H:2 * H])
            gg = jnp.tanh(g[:, 2 * H:3 * H]); o = jax.nn.sigmoid(g[:, 3 * H:4 * H])
            c = f * c + i * gg
            h = o * jnp.tanh(c)
            outs.append(h[0])
        return jnp.stack(outs, 0)

    rows = []
    for b in range(B):
        L = int(seq_lengths[b])
        xb = x[b, :L]
        hf = run_dir(xb, p["wih_f"], p["whh_f"], p["b_f"])
        hb = run_dir(xb[::-1], p["wih_b"], p["whh_b"], p["b_b"])[::-1]
        row = jnp.concatenate([hf, hb], axis=-1)
        row = jnp.concatenate([row, jnp.zeros((T - L, 2 * H), jnp.float32)], axis=0)
        rows.append(row)
    seq = jnp.stack(rows, 0)
    z1 = jax.nn.relu(seq @ p["w1"] + p["b1"])
    z2 = jax.nn.relu(z1 @ p["w2"] + p["b2"])
    return z2 @ p["wl"] + p["bl"]


if __name__ == "__main__":
    B, T, D = 2, 8, 16                   # batch, max seq len, in_size
    n_hid2, n_hid3, num_classes = 32, 32, 4

    key = jax.random.PRNGKey(0)
    kx, kp = jax.random.split(key)
    x = jax.random.normal(kx, (B, T, D), jnp.float32)
    seq_lengths = jnp.array([8, 5], dtype=jnp.int32)   # sorted descending, max == T
    params = init_params(kp, D, n_hid2, n_hid3, num_classes)

    out = decoder_forward(x, seq_lengths, params)
    out = jax.block_until_ready(out)

    ref = ref_forward(x, seq_lengths, params)
    assert out.shape == (B, T, num_classes)
    np.testing.assert_allclose(np.asarray(out), np.asarray(ref), rtol=2e-2, atol=2e-2)
    print("KERNEL_OK")
</pallas_src>

<mosaic_0001>
module attributes {stable_mosaic.version = 11 : i64} {
  func.func @decoder_kernel(%arg0: i32, %arg1: memref<8x2x32xf32, #tpu.memory_space<vmem>>, %arg2: memref<8x2x64xf32, #tpu.memory_space<vmem>>, %arg3: memref<32x256xf32, #tpu.memory_space<vmem>>, %arg4: memref<64x256xf32, #tpu.memory_space<vmem>>, %arg5: memref<1x256xf32, #tpu.memory_space<vmem>>, %arg6: memref<64x32xf32, #tpu.memory_space<vmem>>, %arg7: memref<1x32xf32, #tpu.memory_space<vmem>>, %arg8: memref<32x32xf32, #tpu.memory_space<vmem>>, %arg9: memref<1x32xf32, #tpu.memory_space<vmem>>, %arg10: memref<32x128xf32, #tpu.memory_space<vmem>>, %arg11: memref<1x128xf32, #tpu.memory_space<vmem>>, %arg12: memref<8x2x128xf32, #tpu.memory_space<vmem>>, %arg13: memref<8x2x256xf32, #tpu.memory_space<vmem>>, %arg14: memref<8x2x64xf32, #tpu.memory_space<vmem>>) attributes {dimension_semantics = [#tpu.dimension_semantics<parallel>], iteration_bounds = array<i64: 1>, scalar_prefetch = 0 : i64, scratch_operands = 2 : i64, tpu.core_type = #tpu.core_type<tc>, window_params = [{transform_indices = @transform_0, window_bounds = array<i64: 8, 2, 32>}, {transform_indices = @transform_1, window_bounds = array<i64: 8, 2, 64>}, {pipeline_mode = #tpu.pipeline_mode<synchronous>, transform_indices = @transform_2, window_bounds = array<i64: 32, 256>}, {pipeline_mode = #tpu.pipeline_mode<synchronous>, transform_indices = @transform_3, window_bounds = array<i64: 64, 256>}, {pipeline_mode = #tpu.pipeline_mode<synchronous>, transform_indices = @transform_4, window_bounds = array<i64: 1, 256>}, {pipeline_mode = #tpu.pipeline_mode<synchronous>, transform_indices = @transform_5, window_bounds = array<i64: 64, 32>}, {pipeline_mode = #tpu.pipeline_mode<synchronous>, transform_indices = @transform_6, window_bounds = array<i64: 1, 32>}, {pipeline_mode = #tpu.pipeline_mode<synchronous>, transform_indices = @transform_7, window_bounds = array<i64: 32, 32>}, {pipeline_mode = #tpu.pipeline_mode<synchronous>, transform_indices = @transform_8, window_bounds = array<i64: 1, 32>}, {pipeline_mode = #tpu.pipeline_mode<synchronous>, transform_indices = @transform_9, window_bounds = array<i64: 32, 128>}, {pipeline_mode = #tpu.pipeline_mode<synchronous>, transform_indices = @transform_10, window_bounds = array<i64: 1, 128>}, {transform_indices = @transform_11, window_bounds = array<i64: 8, 2, 128>}]} {
    %c0 = arith.constant 0 : index
    %c0_0 = arith.constant 0 : index
    %c0_1 = arith.constant 0 : index
    %0 = vector.load %arg1[%c0, %c0_0, %c0_1] : memref<8x2x32xf32, #tpu.memory_space<vmem>>, vector<8x2x32xf32>
    %1 = vector.shape_cast %0 : vector<8x2x32xf32> to vector<16x32xf32>
    %c0_2 = arith.constant 0 : index
    %c0_3 = arith.constant 0 : index
    %2 = vector.load %arg3[%c0_2, %c0_3] : memref<32x256xf32, #tpu.memory_space<vmem>>, vector<32x256xf32>
    %cst = arith.constant dense<0.000000e+00> : vector<16x256xf32>
    %3 = tpu.matmul %1, %2, %cst {dimension_numbers = #tpu.dot_dimension_numbers<[1], [0], [0], [1], [0, 0, 1, 1], [], []>} : vector<16x32xf32>, vector<32x256xf32>, vector<16x256xf32> -> vector<16x256xf32>
    %c0_4 = arith.constant 0 : index
    %c0_5 = arith.constant 0 : index
    %4 = vector.load %arg5[%c0_4, %c0_5] : memref<1x256xf32, #tpu.memory_space<vmem>>, vector<1x256xf32>
    %5 = vector.broadcast %4 : vector<1x256xf32> to vector<16x256xf32>
    %6 = arith.addf %3, %5 : vector<16x256xf32>
    %7 = vector.shape_cast %6 : vector<16x256xf32> to vector<8x2x256xf32>
    %c0_6 = arith.constant 0 : index
    %c0_7 = arith.constant 0 : index
    %c0_8 = arith.constant 0 : index
    %8 = vector.load %arg13[%c0_6, %c0_7, %c0_8] : memref<8x2x256xf32, #tpu.memory_space<vmem>>, vector<8x2x256xf32>
    tpu.vector_store %arg13[%c0_6, %c0_7, %c0_8], %7 {strides = array<i32>} : memref<8x2x256xf32, #tpu.memory_space<vmem>>, vector<8x2x256xf32>,
    %cst_9 = arith.constant 0.000000e+00 : f32
    %9 = vector.broadcast %cst_9 : f32 to vector<2x64xf32>
    %cst_10 = arith.constant 0.000000e+00 : f32
    %10 = vector.broadcast %cst_10 : f32 to vector<2x64xf32>
    %c0_i32 = arith.constant 0 : i32
    %c8_i32 = arith.constant 8 : i32
    %11 = arith.addi %c0_i32, %c8_i32 : i32
    %c1_i32 = arith.constant 1 : i32
    %12:2 = scf.for %arg15 = %c0_i32 to %11 step %c1_i32 iter_args(%arg16 = %9, %arg17 = %10) -> (vector<2x64xf32>, vector<2x64xf32>)  : i32 {
      %43 = arith.index_cast %arg15 : i32 to index
      %c0_40 = arith.constant 0 : index
      %c0_41 = arith.constant 0 : index
      %44 = vector.load %arg13[%43, %c0_40, %c0_41] : memref<8x2x256xf32, #tpu.memory_space<vmem>>, vector<1x2x256xf32>
      %45 = vector.shape_cast %44 : vector<1x2x256xf32> to vector<2x256xf32>
      %c0_42 = arith.constant 0 : index
      %c0_43 = arith.constant 0 : index
      %46 = vector.load %arg4[%c0_42, %c0_43] : memref<64x256xf32, #tpu.memory_space<vmem>>, vector<64x256xf32>
      %cst_44 = arith.constant dense<0.000000e+00> : vector<2x256xf32>
      %47 = tpu.matmul %arg16, %46, %cst_44 {dimension_numbers = #tpu.dot_dimension_numbers<[1], [0], [0], [1], [0, 0, 1, 1], [], []>} : vector<2x64xf32>, vector<64x256xf32>, vector<2x256xf32> -> vector<2x256xf32>
      %48 = arith.addf %45, %47 : vector<2x256xf32>
      %49 = vector.extract_strided_slice %48 {offsets = [0, 0], sizes = [2, 192], strides = [1, 1]} : vector<2x256xf32> to vector<2x192xf32>
      %50 = arith.negf %49 : vector<2x192xf32>
      %51 = math.exp %50 : vector<2x192xf32>
      %cst_45 = arith.constant 1.000000e+00 : f32
      %52 = vector.broadcast %cst_45 : f32 to vector<2x192xf32>
      %53 = arith.addf %52, %51 : vector<2x192xf32>
      %54 = arith.divf %52, %53 : vector<2x192xf32>
      %55 = vector.extract_strided_slice %54 {offsets = [0, 0], sizes = [2, 64], strides = [1, 1]} : vector<2x192xf32> to vector<2x64xf32>
      %56 = vector.extract_strided_slice %54 {offsets = [0, 64], sizes = [2, 64], strides = [1, 1]} : vector<2x192xf32> to vector<2x64xf32>
      %57 = vector.extract_strided_slice %54 {offsets = [0, 128], sizes = [2, 64], strides = [1, 1]} : vector<2x192xf32> to vector<2x64xf32>
      %58 = vector.extract_strided_slice %48 {offsets = [0, 192], sizes = [2, 64], strides = [1, 1]} : vector<2x256xf32> to vector<2x64xf32>
      %59 = math.tanh %58 : vector<2x64xf32>
      %60 = arith.mulf %56, %arg17 : vector<2x64xf32>
      %61 = arith.mulf %55, %59 : vector<2x64xf32>
      %62 = arith.addf %60, %61 : vector<2x64xf32>
      %63 = math.tanh %62 : vector<2x64xf32>
      %64 = arith.mulf %57, %63 : vector<2x64xf32>
      %65 = arith.index_cast %arg15 : i32 to index
      %c0_46 = arith.constant 0 : index
      %c0_47 = arith.constant 0 : index
      %66 = vector.load %arg2[%65, %c0_46, %c0_47] : memref<8x2x64xf32, #tpu.memory_space<vmem>>, vector<1x2x64xf32>
      %67 = vector.shape_cast %66 : vector<1x2x64xf32> to vector<2x64xf32>
      %cst_48 = arith.constant 0.000000e+00 : f32
      %68 = vector.broadcast %cst_48 : f32 to vector<2x64xf32>
      %69 = arith.cmpf one, %67, %68 : vector<2x64xf32>
      %70 = arith.select %69, %64, %arg16 : vector<2x64xi1>, vector<2x64xf32>
      %71 = arith.select %69, %62, %arg17 : vector<2x64xi1>, vector<2x64xf32>
      %72 = vector.extract_strided_slice %70 {offsets = [0, 0], sizes = [2, 32], strides = [1, 1]} : vector<2x64xf32> to vector<2x32xf32>
      %73 = vector.shape_cast %72 : vector<2x32xf32> to vector<1x2x32xf32>
      %74 = arith.index_cast %arg15 : i32 to index
      %c0_49 = arith.constant 0 : index
      %c0_50 = arith.constant 0 : index
      %75 = vector.load %arg14[%74, %c0_49, %c0_50] : memref<8x2x64xf32, #tpu.memory_space<vmem>>, vector<1x2x32xf32>
      tpu.vector_store %arg14[%74, %c0_49, %c0_50], %73 {strides = array<i32>} : memref<8x2x64xf32, #tpu.memory_space<vmem>>, vector<1x2x32xf32>,
      %76 = vector.extract_strided_slice %70 {offsets = [0, 32], sizes = [2, 32], strides = [1, 1]} : vector<2x64xf32> to vector<2x32xf32>
      %77 = vector.shape_cast %76 : vector<2x32xf32> to vector<1x2x32xf32>
      %c7_i32 = arith.constant 7 : i32
      %78 = arith.subi %c7_i32, %arg15 : i32
      %79 = arith.index_cast %78 : i32 to index
      %c0_51 = arith.constant 0 : index
      %c32 = arith.constant 32 : index
      %80 = vector.load %arg14[%79, %c0_51, %c32] : memref<8x2x64xf32, #tpu.memory_space<vmem>>, vector<1x2x32xf32>
      tpu.vector_store %arg14[%79, %c0_51, %c32], %77 {strides = array<i32>} : memref<8x2x64xf32, #tpu.memory_space<vmem>>, vector<1x2x32xf32>,
      scf.yield %70, %71 : vector<2x64xf32>, vector<2x64xf32>
    }
    %c8_i32_11 = arith.constant 8 : i32
    %c0_12 = arith.constant 0 : index
    %c0_13 = arith.constant 0 : index
    %c0_14 = arith.constant 0 : index
    %13 = vector.load %arg2[%c0_12, %c0_13, %c0_14] : memref<8x2x64xf32, #tpu.memory_space<vmem>>, vector<8x2x1xf32>
    %cst_15 = arith.constant 0.000000e+00 : f32
    %14 = vector.broadcast %cst_15 : f32 to vector<8x2x1xf32>
    %15 = arith.cmpf one, %13, %14 : vector<8x2x1xf32>
    %c0_16 = arith.constant 0 : index
    %c0_17 = arith.constant 0 : index
    %c0_18 = arith.constant 0 : index
    %16 = vector.load %arg14[%c0_16, %c0_17, %c0_18] : memref<8x2x64xf32, #tpu.memory_space<vmem>>, vector<8x2x64xf32>
    %cst_19 = arith.constant 0.000000e+00 : f32
    %17 = vector.shape_cast %15 : vector<8x2x1xi1> to vector<8x2x1xi1>
    %18 = vector.broadcast %17 : vector<8x2x1xi1> to vector<8x2x64xi1>
    %19 = vector.broadcast %cst_19 : f32 to vector<8x2x64xf32>
    %20 = arith.select %18, %16, %19 : vector<8x2x64xi1>, vector<8x2x64xf32>
    %21 = vector.shape_cast %20 : vector<8x2x64xf32> to vector<16x64xf32>
    %c0_20 = arith.constant 0 : index
    %c0_21 = arith.constant 0 : index
    %22 = vector.load %arg6[%c0_20, %c0_21] : memref<64x32xf32, #tpu.memory_space<vmem>>, vector<64x32xf32>
    %cst_22 = arith.constant dense<0.000000e+00> : vector<16x32xf32>
    %23 = tpu.matmul %21, %22, %cst_22 {dimension_numbers = #tpu.dot_dimension_numbers<[1], [0], [0], [1], [0, 0, 1, 1], [], []>} : vector<16x64xf32>, vector<64x32xf32>, vector<16x32xf32> -> vector<16x32xf32>
    %c0_23 = arith.constant 0 : index
    %c0_24 = arith.constant 0 : index
    %24 = vector.load %arg7[%c0_23, %c0_24] : memref<1x32xf32, #tpu.memory_space<vmem>>, vector<1x32xf32>
    %25 = vector.broadcast %24 : vector<1x32xf32> to vector<16x32xf32>
    %26 = arith.addf %23, %25 : vector<16x32xf32>
    %cst_25 = arith.constant 0.000000e+00 : f32
    %27 = vector.broadcast %cst_25 : f32 to vector<16x32xf32>
    %28 = arith.maximumf %26, %27 : vector<16x32xf32>
    %c0_26 = arith.constant 0 : index
    %c0_27 = arith.constant 0 : index
    %29 = vector.load %arg8[%c0_26, %c0_27] : memref<32x32xf32, #tpu.memory_space<vmem>>, vector<32x32xf32>
    %cst_28 = arith.constant dense<0.000000e+00> : vector<16x32xf32>
    %30 = tpu.matmul %28, %29, %cst_28 {dimension_numbers = #tpu.dot_dimension_numbers<[1], [0], [0], [1], [0, 0, 1, 1], [], []>} : vector<16x32xf32>, vector<32x32xf32>, vector<16x32xf32> -> vector<16x32xf32>
    %c0_29 = arith.constant 0 : index
    %c0_30 = arith.constant 0 : index
    %31 = vector.load %arg9[%c0_29, %c0_30] : memref<1x32xf32, #tpu.memory_space<vmem>>, vector<1x32xf32>
    %32 = vector.broadcast %31 : vector<1x32xf32> to vector<16x32xf32>
    %33 = arith.addf %30, %32 : vector<16x32xf32>
    %cst_31 = arith.constant 0.000000e+00 : f32
    %34 = vector.broadcast %cst_31 : f32 to vector<16x32xf32>
    %35 = arith.maximumf %33, %34 : vector<16x32xf32>
    %c0_32 = arith.constant 0 : index
    %c0_33 = arith.constant 0 : index
    %36 = vector.load %arg10[%c0_32, %c0_33] : memref<32x128xf32, #tpu.memory_space<vmem>>, vector<32x128xf32>
    %cst_34 = arith.constant dense<0.000000e+00> : vector<16x128xf32>
    %37 = tpu.matmul %35, %36, %cst_34 {dimension_numbers = #tpu.dot_dimension_numbers<[1], [0], [0], [1], [0, 0, 1, 1], [], []>} : vector<16x32xf32>, vector<32x128xf32>, vector<16x128xf32> -> vector<16x128xf32>
    %c0_35 = arith.constant 0 : index
    %c0_36 = arith.constant 0 : index
    %38 = vector.load %arg11[%c0_35, %c0_36] : memref<1x128xf32, #tpu.memory_space<vmem>>, vector<1x128xf32>
    %39 = vector.broadcast %38 : vector<1x128xf32> to vector<16x128xf32>
    %40 = arith.addf %37, %39 : vector<16x128xf32>
    %41 = vector.shape_cast %40 : vector<16x128xf32> to vector<8x2x128xf32>
    %c0_37 = arith.constant 0 : index
    %c0_38 = arith.constant 0 : index
    %c0_39 = arith.constant 0 : index
    %42 = vector.load %arg12[%c0_37, %c0_38, %c0_39] : memref<8x2x128xf32, #tpu.memory_space<vmem>>, vector<8x2x128xf32>
    tpu.vector_store %arg12[%c0_37, %c0_38, %c0_39], %41 {strides = array<i32>} : memref<8x2x128xf32, #tpu.memory_space<vmem>>, vector<8x2x128xf32>,
    return
  }
  func.func @transform_0(%arg0: i32) -> (i32, i32, i32) {
    %c0_i32 = arith.constant 0 : i32
    %c0_i32_0 = arith.constant 0 : i32
    %c0_i32_1 = arith.constant 0 : i32
    return %c0_i32, %arg0, %c0_i32_0 : i32, i32, i32
  }
  func.func @transform_1(%arg0: i32) -> (i32, i32, i32) {
    %c0_i32 = arith.constant 0 : i32
    %c0_i32_0 = arith.constant 0 : i32
    %c0_i32_1 = arith.constant 0 : i32
    return %c0_i32, %arg0, %c0_i32_0 : i32, i32, i32
  }
  func.func @transform_2(%arg0: i32) -> (i32, i32) {
    %c0_i32 = arith.constant 0 : i32
    %c0_i32_0 = arith.constant 0 : i32
    %c0_i32_1 = arith.constant 0 : i32
    return %c0_i32, %c0_i32_0 : i32, i32
  }
  func.func @transform_3(%arg0: i32) -> (i32, i32) {
    %c0_i32 = arith.constant 0 : i32
    %c0_i32_0 = arith.constant 0 : i32
    %c0_i32_1 = arith.constant 0 : i32
    return %c0_i32, %c0_i32_0 : i32, i32
  }
  func.func @transform_4(%arg0: i32) -> (i32, i32) {
    %c0_i32 = arith.constant 0 : i32
    %c0_i32_0 = arith.constant 0 : i32
    %c0_i32_1 = arith.constant 0 : i32
    return %c0_i32, %c0_i32_0 : i32, i32
  }
  func.func @transform_5(%arg0: i32) -> (i32, i32) {
    %c0_i32 = arith.constant 0 : i32
    %c0_i32_0 = arith.constant 0 : i32
    %c0_i32_1 = arith.constant 0 : i32
    return %c0_i32, %c0_i32_0 : i32, i32
  }
  func.func @transform_6(%arg0: i32) -> (i32, i32) {
    %c0_i32 = arith.constant 0 : i32
    %c0_i32_0 = arith.constant 0 : i32
    %c0_i32_1 = arith.constant 0 : i32
    return %c0_i32, %c0_i32_0 : i32, i32
  }
  func.func @transform_7(%arg0: i32) -> (i32, i32) {
    %c0_i32 = arith.constant 0 : i32
    %c0_i32_0 = arith.constant 0 : i32
    %c0_i32_1 = arith.constant 0 : i32
    return %c0_i32, %c0_i32_0 : i32, i32
  }
  func.func @transform_8(%arg0: i32) -> (i32, i32) {
    %c0_i32 = arith.constant 0 : i32
    %c0_i32_0 = arith.constant 0 : i32
    %c0_i32_1 = arith.constant 0 : i32
    return %c0_i32, %c0_i32_0 : i32, i32
  }
  func.func @transform_9(%arg0: i32) -> (i32, i32) {
    %c0_i32 = arith.constant 0 : i32
    %c0_i32_0 = arith.constant 0 : i32
    %c0_i32_1 = arith.constant 0 : i32
    return %c0_i32, %c0_i32_0 : i32, i32
  }
  func.func @transform_10(%arg0: i32) -> (i32, i32) {
    %c0_i32 = arith.constant 0 : i32
    %c0_i32_0 = arith.constant 0 : i32
    %c0_i32_1 = arith.constant 0 : i32
    return %c0_i32, %c0_i32_0 : i32, i32
  }
  func.func @transform_11(%arg0: i32) -> (i32, i32, i32) {
    %c0_i32 = arith.constant 0 : i32
    %c0_i32_0 = arith.constant 0 : i32
    %c0_i32_1 = arith.constant 0 : i32
    return %c0_i32, %arg0, %c0_i32_0 : i32, i32, i32
  }
}

</mosaic_0001>

<bundles_post_ra>
// kernel: tpu_custom_call.1
= control target key start
LH: loop header
LB: loop body
LE: loop exit
PB: predicated region body
PF: predicated region fallthrough
CT: control target
= control target key end

     0   :  { %16 = vsyncpa [#allocation5], 0  ;;  %s1645_s0 = inlined_call_operand.hbm [shape: f32[8,2,32], index: 0, kind: input, shape index: {}]   ;;  %s1646_s1 = inlined_call_operand.hbm [shape: f32[8,2,64], index: 1, kind: input, shape index: {}]   ;;  %s1647_s2 = inlined_call_operand.vmem [shape: f32[32,256], index: 2, kind: input, shape index: {}]   ;;  %s1648_s3 = inlined_call_operand.hbm [shape: f32[64,256], index: 3, kind: input, shape index: {}]   ;;  %s1649_s4 = inlined_call_operand.vmem [shape: f32[1,256], index: 4, kind: input, shape index: {}]   ;;  %s1650_s5 = inlined_call_operand.vmem [shape: f32[64,32], index: 5, kind: input, shape index: {}]   ;;  %s1651_s6 = inlined_call_operand.hbm [shape: f32[1,32], index: 6, kind: input, shape index: {}]   ;;  %s1652_s7 = inlined_call_operand.vmem [shape: f32[32,32], index: 7, kind: input, shape index: {}]   ;;  %s1653_s8 = inlined_call_operand.hbm [shape: f32[1,32], index: 8, kind: input, shape index: {}]   ;;  %s1654_s9 = inlined_call_operand.vmem [shape: f32[32,128], index: 9, kind: input, shape index: {}]   ;;  %s1655_s10 = inlined_call_operand.vmem [shape: f32[1,128], index: 10, kind: input, shape index: {}]   ;;  %s1656_s11 = inlined_call_operand.hbm [shape: f32[8,2,128], index: 11, kind: output, shape index: {}]  }
   0x1   :  { %17 = vsyncpa [#allocation8], 0 }
   0x2   :  { %18 = vsyncpa [#allocation11], 0 }
   0x3   :  { %19 = vsyncpa [#allocation6], 0  ;;  %s1337_s17 = smov [#allocation7]   ;;  %s1338_s19 = smov [#allocation10]  }
   0x4   :  { %s37_s18 = sshll.u32 %s1337_s17, 4  ;;  %s68_s20 = sshll.u32 %s1338_s19, 4  ;;  %s38_s18 = int_to_ptr.vmem [resolvable:$true] %s37_s18  ;;  %s1412_s20 = int_to_ptr.vmem [resolvable:$true] %s68_s20 }
   0x5   :  { %s1173_s23 = scalar_lea.hbm %s1646_s1, 256 }
   0x6   :  { %p1174_p0 = scmp.ne.s32.totalorder %s1646_s1, %s1173_s23  ;;  %p1177_p1 = scmp.lt.u32.totalorder %s1173_s23, %s1646_s1 }
   0x8   :  { %p1179_p2 = pnand %p1177_p1, %p1174_p0 }
   0xa   :  { %1182 = shalt.err (!%p1179_p2)
}
   0xb   :  { %s1183_s28 = scalar_lea.vmem %s38_s18, 256  ;;  %p1188_p4 = scmp.lt.s32.totalorder %s38_s18, %s38_s18 }
   0xc   :  { %p1184_p3 = scmp.ne.s32.totalorder %s38_s18, %s1183_s28  ;;  %p1189_p5 = scmp.lt.s32.totalorder %s1183_s28, %s1183_s28 }
   0xe   :  { %p1190_p6 = por %p1189_p5, %p1188_p4 }
  0x10   :  { %p1191_p7 = pnand %p1190_p6, %p1184_p3 }
  0x12   :  { %1194 = shalt.err (!%p1191_p7)
}
  0x13   :  { %s1339_s29 = smov 32   ;;  %s1340_s30 = smov 2  }
  0x14   :  { %43 = dma.hbm_to_vmem [thread:$0]  %s1646_s1, 256, %s38_s18, [#allocation8], %s1339_s29, %s1339_s29, %s1340_s30  }
  0x15   :  { %s1195_s16 = scalar_lea.hbm %s1651_s6, 16 }
  0x16   :  { %p1196_p8 = scmp.ne.s32.totalorder %s1651_s6, %s1195_s16  ;;  %p1199_p9 = scmp.lt.u32.totalorder %s1195_s16, %s1651_s6 }
  0x18   :  { %p1201_p10 = pnand %p1199_p9, %p1196_p8 }
  0x1a   :  { %1204 = shalt.err (!%p1201_p10)
}
  0x1b   :  { %s1205_s23 = scalar_lea.vmem %s1412_s20, 16  ;;  %s1209_s1 = scalar_lea.vmem %s1412_s20, 32 }
  0x1c   :  { %p1206_p11 = scmp.ne.s32.totalorder %s1412_s20, %s1205_s23  ;;  %p1210_p12 = scmp.lt.s32.totalorder %s1412_s20, %s1412_s20 }
  0x1d   :  { %p1211_p13 = scmp.lt.s32.totalorder %s1209_s1, %s1205_s23 }
  0x1f   :  { %p1212_p0 = por %p1211_p13, %p1210_p12 }
  0x21   :  { %p1213_p1 = pnand %p1212_p0, %p1206_p11 }
  0x23   :  { %1216 = shalt.err (!%p1213_p1)
}
  0x24   :  { %71 = dma.hbm_to_vmem [thread:$0]  %s1651_s6, 16, %s1412_s20, [#allocation11]  }
  0x25   :  { %s1341_s25 = smov [#allocation4]   ;;  %s1342_s27 = smov [#allocation9]  }
  0x26   :  { %s25_s26 = sshll.u32 %s1341_s25, 4  ;;  %s51_s28 = sshll.u32 %s1342_s27, 4  ;;  %s26_s26 = int_to_ptr.vmem [resolvable:$true] %s25_s26  ;;  %s1447_s28 = int_to_ptr.vmem [resolvable:$true] %s51_s28 }
  0x27   :  { %s1217_s14 = scalar_lea.hbm %s1645_s0, 256 }
  0x28   :  { %p1218_p2 = scmp.ne.s32.totalorder %s1645_s0, %s1217_s14  ;;  %p1221_p3 = scmp.lt.u32.totalorder %s1217_s14, %s1645_s0 }
  0x2a   :  { %p1223_p4 = pnand %p1221_p3, %p1218_p2 }
  0x2c   :  { %1226 = shalt.err (!%p1223_p4)
}
  0x2d   :  { %s1227_s6 = scalar_lea.vmem %s26_s26, 256  ;;  %p1232_p6 = scmp.lt.s32.totalorder %s26_s26, %s26_s26 }
  0x2e   :  { %p1228_p5 = scmp.ne.s32.totalorder %s26_s26, %s1227_s6  ;;  %p1233_p7 = scmp.lt.s32.totalorder %s1227_s6, %s1227_s6 }
  0x30   :  { %p1234_p8 = por %p1233_p7, %p1232_p6 }
  0x32   :  { %p1235_p9 = pnand %p1234_p8, %p1228_p5 }
  0x34   :  { %1238 = shalt.err (!%p1235_p9)
}
  0x35   :  { %31 = dma.hbm_to_vmem [thread:$0]  %s1645_s0, 256, %s26_s26, [#allocation5], %s1339_s29, %s1339_s29, %s1340_s30  }
  0x36   :  { %s1239_s1 = scalar_lea.hbm %s1648_s3, 2048 }
  0x37   :  { %p1240_p10 = scmp.ne.s32.totalorder %s1648_s3, %s1239_s1  ;;  %p1243_p11 = scmp.lt.u32.totalorder %s1239_s1, %s1648_s3 }
  0x39   :  { %p1245_p12 = pnand %p1243_p11, %p1240_p10 }
  0x3b   :  { %1248 = shalt.err (!%p1245_p12)
}
  0x3c   :  { %s1249_s12 = scalar_lea.vmem %s1447_s28, 2048  ;;  %p1254_p0 = scmp.lt.s32.totalorder %s1447_s28, %s1447_s28 }
  0x3d   :  { %p1250_p13 = scmp.ne.s32.totalorder %s1447_s28, %s1249_s12  ;;  %p1255_p1 = scmp.lt.s32.totalorder %s1249_s12, %s1249_s12 }
  0x3f   :  { %p1256_p2 = por %p1255_p1, %p1254_p0 }
  0x41   :  { %p1257_p3 = pnand %p1256_p2, %p1250_p13 }
  0x43   :  { %1260 = shalt.err (!%p1257_p3)
}
  0x44   :  { %s1343_s0 = smov 256   ;;  %s1344_s26 = smov 16  }
  0x45   :  { %57 = dma.hbm_to_vmem [thread:$0]  %s1648_s3, 2048, %s1447_s28, [#allocation8], %s1343_s0, %s1343_s0, %s1344_s26  }
  0x46   :  { %s1345_s15 = smov [#allocation12]   ;;  %s1261_s6 = scalar_lea.hbm %s1653_s8, 16 }
  0x47   :  { %s80_s16 = sshll.u32 %s1345_s15, 4  ;;  %p1262_p4 = scmp.ne.s32.totalorder %s1653_s8, %s1261_s6  ;;  %s81_s16 = int_to_ptr.vmem [resolvable:$true] %s80_s16 }
  0x48   :  { %p1265_p5 = scmp.lt.u32.totalorder %s1261_s6, %s1653_s8 }
  0x4a   :  { %p1267_p6 = pnand %p1265_p5, %p1262_p4 }
  0x4c   :  { %1270 = shalt.err (!%p1267_p6)
}
  0x4d   :  { %s1271_s1 = scalar_lea.vmem %s81_s16, 16  ;;  %s1275_s3 = scalar_lea.vmem %s81_s16, 32 }
  0x4e   :  { %p1272_p7 = scmp.ne.s32.totalorder %s81_s16, %s1271_s1  ;;  %p1276_p8 = scmp.lt.s32.totalorder %s81_s16, %s81_s16 }
  0x4f   :  { %p1277_p9 = scmp.lt.s32.totalorder %s1275_s3, %s1271_s1 }
  0x51   :  { %p1278_p10 = por %p1277_p9, %p1276_p8 }
  0x53   :  { %p1279_p11 = pnand %p1278_p10, %p1272_p7 }
  0x55   :  { %1282 = shalt.err (!%p1279_p11)
}
  0x56   :  { %83 = dma.hbm_to_vmem [thread:$0]  %s1653_s8, 16, %s81_s16, [#allocation11]  }
  0x57   :  { %1317 = dma.done.wait [#allocation5], 256  }
  0x58   :  { %1318 = vsyncadd [#allocation5], 4294967040 }
  0x59   :  { %1319 = dma.done.wait [#allocation8], 2304  }
  0x5a   :  { %1320 = vsyncadd [#allocation8], 4294964992 }
  0x5b   :  { %1321 = dma.done.wait [#allocation11], 32  }
  0x5c   :  { %1322 = vsyncadd [#allocation11], 4294967264  ;;  %v1346_v0 = vmov 0.0   ;;  %v121_v1 = vlaneseq  ;;  %v1347_v2 = vmov 1983009808   ;;  %v112_v6 = vld [vmem:[%s1647_s2 + $0x8] sm:$0xff] }
  0x5d   :  { %242 = vmatprep.mubr.f32.mxu0 %v1346_v0  ;;  %248 = vmatprep.mubr.f32.mxu1 %v1346_v0  ;;  %v142_v3 = vunpack.c.l.s4 %v1347_v2  ;;  %v114_v7 = vld [vmem:[%s1647_s2 + $0x18] sm:$0xff]  ;;  %v111_v8 = vld [vmem:[%s1647_s2] sm:$0xff]  ;;  %v113_v10 = vld [vmem:[%s1647_s2 + $0x10] sm:$0xff]  ;;  %vm173_vm0 = vcmask 261120   ;;  %v1532_v62 = vmov 0.0   ;;  %v1534_v63 = vmov 0.0  }
  0x5e   :  { %v122_v4 = vshrl.u32 %v121_v1, 7  ;;  %v1064_v9 = vpack.c.bf16 %v114_v7, %v112_v6  ;;  %v116_v11 = vld [vmem:[%s1647_s2 + $0x28] sm:$0xff]  ;;  %v118_v12 = vld [vmem:[%s1647_s2 + $0x38] sm:$0xff]  ;;  %v1066_v13 = vpack.c.bf16 %v113_v10, %v111_v8  ;;  %v115_v15 = vld [vmem:[%s1647_s2 + $0x20] sm:$0xff] }
  0x5f   :  { %v143_v5 = vunpack.c.0.s8 %v142_v3  ;;  %v1068_v14 = vpack.c.bf16 %v118_v12, %v116_v11  ;;  %v117_v16 = vld [vmem:[%s1647_s2 + $0x30] sm:$0xff]  ;;  %v107_v25 = vld [vmem:[#allocation4 + $0x8] sm:$0x3]  ;;  %v108_v26 = vld [vmem:[#allocation4 + $0xa] sm:$0x3] }
  0x60   :  { %v103_v17 = vld [vmem:[#allocation4] sm:$0x3]  ;;  %1065 = vmatprep.subr.bf16.mxu0 %v1064_v9  ;;  %1120 = vmatprep.subr.bf16.mxu1 %v1064_v9  ;;  %v104_v19 = vld [vmem:[#allocation4 + $0x2] sm:$0x3]  ;;  %v105_v20 = vld [vmem:[#allocation4 + $0x4] sm:$0x3]  ;;  %v1070_v22 = vpack.c.bf16 %v117_v16, %v115_v15  ;;  %v156_v29 = vcombine.low %v107_v25, %v108_v26 }
  0x61   :  { %v1517_v18 = vsub.s32 %v143_v5, %v122_v4  ;;  %v106_v21 = vld [vmem:[#allocation4 + $0x6] sm:$0x3]  ;;  %1067 = vmatpush1.bf16.msra.mxu0 %v1066_v13  ;;  %1122 = vmatpush1.bf16.msra.mxu1 %v1066_v13  ;;  %v139_v23 = vcombine.low %v103_v17, %v104_v19  ;;  %v109_v27 = vld [vmem:[#allocation4 + $0xc] sm:$0x3]  ;;  %v110_v28 = vld [vmem:[#allocation4 + $0xe] sm:$0x3] }
  0x62   :  { %v140_v24 = vcombine.low %v105_v20, %v106_v21  ;;  %1069 = vmatprep.subr.bf16.mxu0 %v1068_v14  ;;  %1121 = vmatprep.subr.bf16.mxu1 %v1068_v14  ;;  %v157_v32 = vcombine.low %v109_v27, %v110_v28  ;;  %v123_v37 = vsub.s32 0, %v122_v4  ;;  %v119_v38 = vld [vmem:[%s1649_s4] sm:$0x3]  ;;  %v127_v39 = vsub.s32 1, %v122_v4  ;;  %s1536_s4 = smov 0  }
  0x63   :  { %v147_v30 = vrot.slane %v139_v23, %v1517_v18  ;;  %v164_v33 = vrot.slane %v156_v29, %v1517_v18 }
  0x64   :  { %v154_v31 = vrot.slane %v140_v24, %v1517_v18  ;;  %v171_v35 = vrot.slane %v157_v32, %v1517_v18  ;;  %v124_v40 = vrot.slane %v119_v38, %v123_v37  ;;  %v128_v41 = vrot.slane %v119_v38, %v127_v39 }
  0x65   :  { %1071 = vmatpush1.bf16.msra.mxu0 %v1070_v22  ;;  %1123 = vmatpush1.bf16.msra.mxu1 %v1070_v22 }
  0x66   :  { %v155_v34 = vcombine.low %v147_v30, %v154_v31  ;;  %v172_v36 = vcombine.low %v164_v33, %v171_v35 }
  0x68   :  { %976 = vmatmul.mubr.msk.f32.vlgmr.msra.gmra.mrb[0].mxu0 %vm173_vm0, %v155_v34  ;;  %977 = vmatmul.mubr.msk.f32.vlgmr.msra.gmra.mrb[0].mxu1 %vm173_vm0, %v172_v36 }
 0x13b   :  { %v244_v42 = vpop.f32.mrb[0].mxu0  ;;  %v250_v44 = vpop.f32.mrb[0].mxu1 }
 0x13c   :  { %v245_v43 = vadd.f32 %v244_v42, %v124_v40  ;;  %v246_v45 = vpop.f32.mrb[1].mxu0  ;;  %v251_v46 = vadd.f32 %v250_v44, %v124_v40  ;;  %v252_v48 = vpop.f32.mrb[1].mxu1 }
 0x13d   :  { %v247_v47 = vadd.f32 %v246_v45, %v128_v41  ;;  %v253_v49 = vadd.f32 %v252_v48, %v128_v41 }
 0x13f   :  { %v259_v50 = vcombine.low %v245_v43, %v247_v47  ;;  %v260_v51 = vcombine.high %v245_v43, %v247_v47  ;;  %v277_v52 = vcombine.low %v251_v46, %v253_v49  ;;  %v278_v53 = vcombine.high %v251_v46, %v253_v49 }
 0x141   :  { %v267_v54 = vrot.slane %v259_v50, %v1517_v18  ;;  %v274_v55 = vrot.slane %v260_v51, %v1517_v18  ;;  %978 = vst.sshfl [vmem:[#allocation2] sm:$0x33 pattern:$0x76325410] %v259_v50  ;;  %v285_v56 = vrot.slane %v277_v52, %v1517_v18  ;;  %v292_v57 = vrot.slane %v278_v53, %v1517_v18 }
 0x142   :  { %979 = vst.sshfl [vmem:[#allocation2 + $0x8] sm:$0x33 pattern:$0x76325410] %v260_v51 }
 0x143   :  { %980 = vst.sshfl [vmem:[#allocation2 + $0x10] sm:$0x33 pattern:$0x76325410] %v277_v52  ;;  %v275_v58 = vcombine.high %v267_v54, %v267_v54  ;;  %v276_v59 = vcombine.high %v274_v55, %v274_v55  ;;  %v293_v60 = vcombine.high %v285_v56, %v285_v56  ;;  %v294_v61 = vcombine.high %v292_v57, %v292_v57 }
 0x144   :  { %981 = vst.sshfl [vmem:[#allocation2 + $0x18] sm:$0x33 pattern:$0x76325410] %v278_v53 }
 0x145   :  { %304 = vst [vmem:[#allocation2 + $0x4] sm:$0xf] %v275_v58  ;;  %306 = vst [vmem:[#allocation2 + $0xc] sm:$0xf] %v276_v59 }
 0x146   :  { %308 = vst [vmem:[#allocation2 + $0x14] sm:$0xf] %v293_v60  ;;  %310 = vst [vmem:[#allocation2 + $0x1c] sm:$0xf] %v294_v61 }
 0x147 LB: > { %v324_v0 = vld [vmem:[#allocation9 + $0x8] sm:$0xff]  ;;  %v326_v1 = vld [vmem:[#allocation9 + $0x18] sm:$0xff]  ;;  %v323_v2 = vld [vmem:[#allocation9] sm:$0xff]  ;;  %v1348_v7 = vmov 0.0   ;;  %vm339_vm1 = vcmask 523264   ;;  %s1000_s23 = sshll.u32 %s1335_s4, 2  ;;  %v445_v32 = vrot.slane %v1327_v62, %v1517_v18  ;;  %s1335_s4 = sphi %s1536_s4, %s316_s4   ;;  %v1331_v63 = vphi %v1534_v63, %v468_v63   ;;  %v1327_v62 = vphi %v1532_v62, %v480_v62  }
 0x148   : > { %v1072_v3 = vpack.c.bf16 %v326_v1, %v324_v0  ;;  %v325_v4 = vld [vmem:[#allocation9 + $0x10] sm:$0xff]  ;;  %v328_v5 = vld [vmem:[#allocation9 + $0x28] sm:$0xff]  ;;  %v330_v6 = vld [vmem:[#allocation9 + $0x38] sm:$0xff]  ;;  %407 = vmatprep.mubr.f32.mxu0 %v1348_v7  ;;  %s321_s1 = scalar_lea.vmem [#allocation2], %s1000_s23  ;;  %s1349_s3 = smov 64   ;;  %vm482_vm3 = vcmask 254976  }
 0x149   : > { %v1074_v8 = vpack.c.bf16 %v325_v4, %v323_v2  ;;  %v1076_v9 = vpack.c.bf16 %v330_v6, %v328_v5  ;;  %v327_v10 = vld [vmem:[#allocation9 + $0x20] sm:$0xff]  ;;  %v329_v11 = vld [vmem:[#allocation9 + $0x30] sm:$0xff]  ;;  %v332_v12 = vld [vmem:[#allocation9 + $0x48] sm:$0xff]  ;;  %s982_s28 = sshll.u32 %s1335_s4, 1  ;;  %s484_s24 = ssub.s32 7, %s1335_s4  ;;  %vm487_vm4 = vcmask 517376  }
 0x14a   : > { %1073 = vmatprep.subr.bf16.mxu0 %v1072_v3  ;;  %v334_v13 = vld [vmem:[#allocation9 + $0x58] sm:$0xff]  ;;  %v1078_v14 = vpack.c.bf16 %v329_v11, %v327_v10  ;;  %v331_v16 = vld [vmem:[#allocation9 + $0x40] sm:$0xff]  ;;  %v333_v17 = vld [vmem:[#allocation9 + $0x50] sm:$0xff]  ;;  %s465_s18 = scalar_lea.vmem [#allocation7], %s982_s28  ;;  %s986_s25 = sshll.u32 %s484_s24, 1 }
 0x14b   : > { %1075 = vmatpush1.bf16.msra.mxu0 %v1074_v8  ;;  %v1080_v15 = vpack.c.bf16 %v334_v13, %v332_v12  ;;  %v336_v19 = vld [vmem:[#allocation9 + $0x68] sm:$0xff]  ;;  %v338_v20 = vld [vmem:[#allocation9 + $0x78] sm:$0xff]  ;;  %v1082_v21 = vpack.c.bf16 %v333_v17, %v331_v16  ;;  %v335_v23 = vld [vmem:[#allocation9 + $0x60] sm:$0xff]  ;;  %s481_s27 = scalar_lea.vmem [#allocation3], %s982_s28  ;;  %s486_s8 = scalar_lea.vmem [#allocation3], %s986_s25 }
 0x14c   : > { %1077 = vmatprep.subr.bf16.mxu0 %v1076_v9  ;;  %v1084_v22 = vpack.c.bf16 %v338_v20, %v336_v19  ;;  %v337_v24 = vld [vmem:[#allocation9 + $0x70] sm:$0xff]  ;;  %s316_s4 = sadd.s32 1, %s1335_s4  }
 0x14d   : > { %v1086_v25 = vpack.c.bf16 %v337_v24, %v335_v23  ;;  %v322_v29 = vld [vmem:[%s321_s1] sm:$0xf]  ;;  %p313_p12 = scmp.ge.s32.totalorder %s316_s4, 8  }
 0x14e   : > { %v466_v47 = vld [vmem:[%s465_s18] sm:$0x3]  ;;  %v491_v52 = vld [vmem:[#allocation7 + $0x4] sm:$0x3] (%p313_p12)  ;;  %v1350_v54 = vmov (%p313_p12), 0   ;;  %v562_v2 = vld [vmem:[%s1650_s5 + $0x8] sm:$0xff] (%p313_p12) }
 0x14f   : > { %1079 = vmatpush1.bf16.msra.mxu0 %v1078_v14  ;;  %vm467_vm2 = vcmp.ne.f32.partialorder %v466_v47, 0.0  ;;  %v489_v53 = vld [vmem:[#allocation7] sm:$0x3] (%p313_p12)  ;;  %1172 = vset.pattern.permute.xlu1 (%p313_p12), %v1350_v54  ;;  %vm499_vm5 = vcmp.ne.f32.partialorder (%p313_p12), %v491_v52, 0.0  ;;  %v492_v55 = vld [vmem:[#allocation7 + $0x6] sm:$0x3] (%p313_p12) }
 0x150   : > { %1081 = vmatprep.subr.bf16.mxu0 %v1080_v15  ;;  %1171 = vset.pattern.permute.xlu0 (%p313_p12), %v1350_v54  ;;  %vm497_vm6 = vcmp.ne.f32.partialorder (%p313_p12), %v489_v53, 0.0  ;;  %v490_v56 = vld [vmem:[#allocation7 + $0x2] sm:$0x3] (%p313_p12)  ;;  %v515_v57 = vsel (%p313_p12), %vm499_vm5, 1, %v1350_v54  ;;  %vm500_vm7 = vcmp.ne.f32.partialorder (%p313_p12), %v492_v55, 0.0  ;;  %v563_v6 = vld [vmem:[%s1650_s5 + $0x10] sm:$0xff] (%p313_p12) }
 0x151   :  { %v513_v58 = vsel (%p313_p12), %vm497_vm6, 1, %v1350_v54  ;;  %vm498_vm8 = vcmp.ne.f32.partialorder (%p313_p12), %v490_v56, 0.0  ;;  %v494_v59 = vld [vmem:[#allocation7 + $0xa] sm:$0x3] (%p313_p12)  ;;  %v493_v60 = vld [vmem:[#allocation7 + $0x8] sm:$0x3] (%p313_p12) }
 0x152   :  { %v516_v61 = vsel (%p313_p12), %vm500_vm7, 1, %v1350_v54  ;;  %vm502_vm9 = vcmp.ne.f32.partialorder (%p313_p12), %v494_v59, 0.0  ;;  %vm501_vm10 = vcmp.ne.f32.partialorder (%p313_p12), %v493_v60, 0.0  ;;  %v496_v0 = vld [vmem:[#allocation7 + $0xe] sm:$0x3] (%p313_p12)  ;;  %v564_v7 = vld [vmem:[%s1650_s5 + $0x18] sm:$0xff] (%p313_p12) }
 0x153   : > { %1083 = vmatpush1.bf16.msra.mxu0 %v1082_v21  ;;  %v495_v1 = vld [vmem:[#allocation7 + $0xc] sm:$0x3] (%p313_p12)  ;;  %v518_v3 = vsel (%p313_p12), %vm502_vm9, 1, %v1350_v54  ;;  %v517_v4 = vsel (%p313_p12), %vm501_vm10, 1, %v1350_v54  ;;  %vm504_vm11 = vcmp.ne.f32.partialorder (%p313_p12), %v496_v0, 0.0  ;;  %v1092_v8 = vpack.c.bf16 (%p313_p12), %v564_v7, %v563_v6  ;;  %v565_v11 = vld [vmem:[%s1650_s5 + $0x20] sm:$0xff] (%p313_p12) }
 0x154   : > { %1085 = vmatprep.subr.bf16.mxu0 %v1084_v22  ;;  %vm503_vm12 = vcmp.ne.f32.partialorder (%p313_p12), %v495_v1, 0.0  ;;  %v520_v9 = vsel (%p313_p12), %vm504_vm11, 1, %v1350_v54  ;;  %v566_v12 = vld [vmem:[%s1650_s5 + $0x28] sm:$0xff] (%p313_p12)  ;;  %v567_v14 = vld [vmem:[%s1650_s5 + $0x30] sm:$0xff] (%p313_p12)  ;;  %v568_v15 = vld [vmem:[%s1650_s5 + $0x38] sm:$0xff] (%p313_p12) }
 0x155   :  { %v519_v10 = vsel (%p313_p12), %vm503_vm12, 1, %v1350_v54  ;;  %v1096_v13 = vpack.c.bf16 (%p313_p12), %v566_v12, %v565_v11  ;;  %v1100_v16 = vpack.c.bf16 (%p313_p12), %v568_v15, %v567_v14  ;;  %v700_v17 = vld [vmem:[%s1652_s7] sm:$0xff] (%p313_p12)  ;;  %v701_v19 = vld [vmem:[%s1652_s7 + $0x8] sm:$0xff] (%p313_p12)  ;;  %v702_v55 = vld [vmem:[%s1652_s7 + $0x10] sm:$0xff] (%p313_p12) }
 0x156   :  { %v1104_v20 = vpack.c.bf16 (%p313_p12), %v701_v19, %v700_v17  ;;  %v703_v56 = vld [vmem:[%s1652_s7 + $0x18] sm:$0xff] (%p313_p12)  ;;  %v795_v59 = vld [vmem:[%s1654_s9 + $0x8] sm:$0xff] (%p313_p12)  ;;  %v990_v7 = vld [vmem:[#allocation12] ss:$0 sm:$0xff] (%p313_p12) }
 0x157   : > { %1087 = vmatpush1.bf16.msra.mxu0 %v1086_v25  ;;  %v993_v14 = vld [vmem:[%s1655_s10] ss:$0 sm:$0xff] (%p313_p12) }
 0x158   :  { %1105 = vmatprep.subr.bf16.mxu1 (%p313_p12), %v1104_v20 }
 0x159   :  { %1107 = vmatpush3.bf16.msra.mxu1 (%p313_p12), %v1104_v20 }
 0x15a   : > { %984 = vmatmul.mubr.msk.f32.vlgmr.msra.gmra.mrb[0].mxu0 %vm339_vm1, %v1331_v63 }
 0x22d   : > { %v409_v26 = vpop.f32.mrb[0].mxu0 }
 0x22e   : > { %v411_v27 = vpop.f32.mrb[1].mxu0 }
 0x22f   : > { %v416_v28 = vcombine.low %v409_v26, %v411_v27 }
 0x231   : > { %v423_v30 = vrot.slane %v416_v28, %v1517_v18 }
 0x233   : > { %v425_v31 = vadd.f32 %v423_v30, %v322_v29 }
 0x235   : > { %433 = vrot.lane.b32.xlu0 %v425_v31, %s1349_s3  ;;  %v985_v33 = vmul.f32 -1.442695, %v425_v31 }
 0x237   : > { %1163 = vpow2.f32 %v985_v33 }
 0x239   : > { %446 = vrot.lane.b32.xlu0 %v445_v32, %s1349_s3 }
 0x241   : > { %v1164_v34 = vpop.eup %1163 }
 0x242   : > { %v429_v35 = vadd.f32 1.0, %v1164_v34 }
 0x244   : > { %1165 = vrcp.f32 %v429_v35 }
 0x24e   : > { %v1166_v38 = vpop.eup %1165 }
 0x24f   : > { %v458_v49 = vrot.slane %v1166_v38, 2 }
 0x2a7   : > { %v434_v36 = vpop.permute.xlu0 %433 }
 0x2a8   : > { %v435_v37 = vrot.slane %v434_v36, 2 }
 0x2aa   : > { %1167 = vtanh.f32 %v435_v37 }
 0x2ab   : > { %v447_v41 = vpop.permute.xlu0 %446 }
 0x2ac   : > { %v449_v42 = vmul.f32 %v1166_v38, %v447_v41 }
 0x2b4   : > { %v1168_v39 = vpop.eup %1167 }
 0x2b5   : > { %v450_v40 = vmul.f32 %v1168_v39, %v1166_v38 }
 0x2b7   : > { %452 = vrot.lane.b32.xlu1 %v450_v40, %s1349_s3 }
 0x329   : > { %v453_v43 = vpop.permute.xlu1 %452 }
 0x32a   : > { %v455_v44 = vadd.f32 %v453_v43, %v449_v42 }
 0x32c   : > { %1169 = vtanh.f32 %v455_v44  ;;  %v476_v45 = vrot.slane %v455_v44, %v1517_v18 }
 0x32e   : > { %477 = vrot.lane.b32.xlu0 %v476_v45, %s1349_s3 }
 0x332   :  { %522 = vperm.xlu0 (%p313_p12), %1171, %v513_v58   ;;  %v794_v58 = vld [vmem:[%s1654_s9] sm:$0xff] (%p313_p12) }
 0x333   :  { %v1112_v60 = vpack.c.bf16 (%p313_p12), %v795_v59, %v794_v58 }
 0x336   : > { %v1170_v46 = vpop.eup %1169 }
 0x337   : > { %461 = vrot.lane.b32.xlu1 %v1170_v46, %s1349_s3 }
 0x33b   :  { %528 = vperm.xlu1 (%p313_p12), %1172, %v515_v57   ;;  %v1108_v57 = vpack.c.bf16 (%p313_p12), %v703_v56, %v702_v55 }
 0x33d   :  { %1109 = vmatprep.subr.bf16.mxu1 (%p313_p12), %v1108_v57 }
 0x33e   :  { %1111 = vmatpush3.bf16.msra.mxu1 (%p313_p12), %v1108_v57 }
 0x33f   :  { %531 = vperm.xlu1 (%p313_p12), %1172, %v516_v61   ;;  %1113 = vmatprep.subr.bf16.mxu1 (%p313_p12), %v1112_v60  ;;  %v987_v61 = vld [vmem:[#allocation10] ss:$0 sm:$0xff] (%p313_p12) }
 0x343   :  { %537 = vperm.xlu1 (%p313_p12), %1172, %v518_v3  }
 0x347   :  { %543 = vperm.xlu1 (%p313_p12), %1172, %v520_v9  }
 0x3a0   : > { %v478_v48 = vpop.permute.xlu0 %477 }
 0x3a1   : > { %v480_v62 = vsel %vm467_vm2, %v478_v48, %v1327_v62  }
 0x3a2   :  { %v561_v62 = vld [vmem:[%s1650_s5] sm:$0xff] (%p313_p12) }
 0x3a3   :  { %v1088_v5 = vpack.c.bf16 (%p313_p12), %v562_v2, %v561_v62 }
 0x3a5   :  { %1089 = vmatprep.subr.bf16.mxu0 (%p313_p12), %v1088_v5 }
 0x3a6   :  { %1091 = vmatpush3.bf16.msra.mxu0 (%p313_p12), %v1088_v5  ;;  %v797_v5 = vld [vmem:[%s1654_s9 + $0x18] sm:$0xff] (%p313_p12) }
 0x3a7   :  { %1093 = vmatprep.subr.bf16.mxu0 (%p313_p12), %v1092_v8 }
 0x3a8   :  { %315 = sbr.rel (!%p313_p12) target bundleno = 327 (0x147), region = 95 }
 0x3a9   : > { %v462_v50 = vpop.permute.xlu1 %461 }
 0x3aa   : > { %v464_v51 = vmul.f32 %v462_v50, %v458_v49  ;;  %1095 = vmatpush3.bf16.msra.mxu0 (%p313_p12), %v1092_v8 }
 0x3ab   :  { %1097 = vmatprep.subr.bf16.mxu0 (%p313_p12), %v1096_v13 }
 0x3ac   : > { %v468_v63 = vsel %vm467_vm2, %v464_v51, %v1331_v63  }
 0x3ad   : > { %483 = vst.msk [vmem:[%s481_s27] sm:$0x3] %vm482_vm3, %v468_v63 }
 0x3ae   : > { %488 = vst.msk [vmem:[%s486_s8] sm:$0x3] %vm487_vm4, %v468_v63  ;;  %v514_v63 = vsel (%p313_p12), %vm498_vm8, 1, %v1350_v54  ;;  %1099 = vmatpush3.bf16.msra.mxu0 (%p313_p12), %v1096_v13 }
 0x3af   :  { %525 = vperm.xlu0 %1171, %v514_v63   ;;  %1101 = vmatprep.subr.bf16.mxu0 %v1100_v16 }
 0x3b1   :  { %v523_v22 = vpop.permute.xlu0 %522 }
 0x3b2   :  { %1103 = vmatpush3.bf16.msra.mxu0 %v1100_v16  ;;  %vm545_vm14 = vcmp.eq.s32.totalorder %v523_v22, 1 }
 0x3b3   :  { %534 = vperm.xlu0 %1171, %v517_v4   ;;  %v796_v4 = vld [vmem:[%s1654_s9 + $0x10] sm:$0xff]  ;;  %s1351_s9 = smov [#allocation13]  }
 0x3b4   :  { %v1116_v6 = vpack.c.bf16 %v797_v5, %v796_v4  ;;  %s943_s19 = sshll.u32 %s1351_s9, 4  ;;  %s944_s19 = int_to_ptr.vmem [resolvable:$true] %s943_s19 }
 0x3b5   :  { %v507_v23 = vld [vmem:[#allocation3 + $0x4] sm:$0x3]  ;;  %v505_v24 = vld [vmem:[#allocation3] sm:$0x3]  ;;  %v508_v25 = vld [vmem:[#allocation3 + $0x6] sm:$0x3]  ;;  %p1288_p0 = scmp.lt.s32.totalorder %s944_s19, %s944_s19 }
 0x3b6   :  { %v506_v26 = vld [vmem:[#allocation3 + $0x2] sm:$0x3]  ;;  %v553_v30 = vsel %vm545_vm14, %v505_v24, 0.0  ;;  %v510_v33 = vld [vmem:[#allocation3 + $0xa] sm:$0x3]  ;;  %s1283_s10 = scalar_lea.vmem %s944_s19, 256 }
 0x3b7   :  { %540 = vperm.xlu0 %1171, %v519_v10   ;;  %v509_v34 = vld [vmem:[#allocation3 + $0x8] sm:$0x3]  ;;  %v512_v43 = vld [vmem:[#allocation3 + $0xe] sm:$0x3]  ;;  %v511_v44 = vld [vmem:[#allocation3 + $0xc] sm:$0x3]  ;;  %p1284_p13 = scmp.ne.s32.totalorder %s944_s19, %s1283_s10  ;;  %p1289_p1 = scmp.lt.s32.totalorder %s1283_s10, %s1283_s10 }
 0x3b9   :  { %p1290_p2 = por %p1289_p1, %p1288_p0 }
 0x3ba   :  { %v529_v21 = vpop.permute.xlu1 %528 }
 0x3bb   :  { %vm547_vm13 = vcmp.eq.s32.totalorder %v529_v21, 1  ;;  %p1291_p3 = pnand %p1290_p2, %p1284_p13 }
 0x3bc   :  { %v555_v29 = vsel %vm547_vm13, %v507_v23, 0.0 }
 0x3be   :  { %v532_v27 = vpop.permute.xlu1 %531 }
 0x3bf   :  { %vm548_vm15 = vcmp.eq.s32.totalorder %v532_v27, 1 }
 0x3c0   :  { %v556_v31 = vsel %vm548_vm15, %v508_v25, 0.0 }
 0x3c1   :  { %v585_v36 = vcombine.low %v555_v29, %v556_v31 }
 0x3c2   :  { %v538_v37 = vpop.permute.xlu1 %537 }
 0x3c3   :  { %vm550_vm3 = vcmp.eq.s32.totalorder %v538_v37, 1  ;;  %v599_v40 = vrot.slane %v585_v36, %v1517_v18 }
 0x3c4   :  { %v558_v41 = vsel %vm550_vm3, %v510_v33, 0.0 }
 0x3c6   :  { %v544_v46 = vpop.permute.xlu1 %543 }
 0x3c7   :  { %vm552_vm5 = vcmp.eq.s32.totalorder %v544_v46, 1 }
 0x3c8   :  { %v560_v49 = vsel %vm552_vm5, %v512_v43, 0.0 }
 0x42e   :  { %v526_v28 = vpop.permute.xlu0 %525 }
 0x42f   :  { %vm546_vm2 = vcmp.eq.s32.totalorder %v526_v28, 1 }
 0x430   :  { %v554_v32 = vsel %vm546_vm2, %v506_v26, 0.0 }
 0x431   :  { %v584_v35 = vcombine.low %v553_v30, %v554_v32 }
 0x432   :  { %v535_v38 = vpop.permute.xlu0 %534 }
 0x433   :  { %vm549_vm4 = vcmp.eq.s32.totalorder %v535_v38, 1  ;;  %v592_v39 = vrot.slane %v584_v35, %v1517_v18 }
 0x434   :  { %v557_v42 = vsel %vm549_vm4, %v509_v34, 0.0 }
 0x435   :  { %v600_v45 = vcombine.low %v592_v39, %v599_v40  ;;  %v601_v48 = vcombine.low %v557_v42, %v558_v41 }
 0x436   :  { %v541_v47 = vpop.permute.xlu0 %540 }
 0x437   :  { %vm551_vm6 = vcmp.eq.s32.totalorder %v541_v47, 1  ;;  %1039 = vmatprep.mubr.msk.f32.mxu0 %vm339_vm1, %v600_v45  ;;  %v609_v52 = vrot.slane %v601_v48, %v1517_v18 }
 0x438   :  { %v559_v50 = vsel %vm551_vm6, %v511_v44, 0.0 }
 0x439   :  { %v602_v51 = vcombine.low %v559_v50, %v560_v49 }
 0x43b   :  { %v616_v53 = vrot.slane %v602_v51, %v1517_v18 }
 0x43d   :  { %v617_v54 = vcombine.low %v609_v52, %v616_v53 }
 0x43f   :  { %1040 = vmatmul.mubr.msk.f32.vlgmr.msra.gmra.mrb[0].mxu0 %vm339_vm1, %v617_v54 }
 0x512   :  { %v1041_v63 = vpop.f32.mrb[0].mxu0 }
 0x513   :  { %v695_v62 = vadd.f32 %v1041_v63, %v987_v61  ;;  %v689_v0 = vpop.f32.mrb[1].mxu0 }
 0x514   :  { %v690_v1 = vadd.f32 %v987_v61, %v689_v0 }
 0x515   :  { %v699_v3 = vmax.f32 %v695_v62, 0.0 }
 0x516   :  { %v698_v2 = vmax.f32 %v690_v1, 0.0 }
 0x518   :  { %1050 = vmatprep.mubr.msk.f32.mxu1 %vm173_vm0, %v698_v2 }
 0x519   :  { %1051 = vmatmul.mubr.msk.f32.vlgmr.msra.gmra.mrb[0].mxu1 %vm173_vm0, %v699_v3 }
 0x51a   :  { %1115 = vmatpush3.bf16.msra.mxu1 %v1112_v60 }
 0x51b   :  { %1117 = vmatprep.subr.bf16.mxu1 %v1116_v6 }
 0x51e   :  { %1119 = vmatpush3.bf16.msra.mxu1 %v1116_v6 }
 0x5ec   :  { %v1052_v8 = vpop.f32.mrb[0].mxu1 }
 0x5ed   :  { %v789_v9 = vadd.f32 %v1052_v8, %v990_v7  ;;  %v783_v10 = vpop.f32.mrb[1].mxu1 }
 0x5ee   :  { %v784_v11 = vadd.f32 %v990_v7, %v783_v10 }
 0x5ef   :  { %v793_v13 = vmax.f32 %v789_v9, 0.0 }
 0x5f0   :  { %v792_v12 = vmax.f32 %v784_v11, 0.0 }
 0x5f2   :  { %1061 = vmatprep.mubr.msk.f32.mxu1 %vm173_vm0, %v792_v12 }
 0x5f3   :  { %1062 = vmatmul.mubr.msk.f32.vlgmr.msra.gmra.mrb[2].mxu1 %vm173_vm0, %v793_v13 }
 0x6c6   :  { %v1063_v15 = vpop.f32.mrb[2].mxu1 }
 0x6c7   :  { %v883_v16 = vadd.f32 %v1063_v15, %v993_v14  ;;  %v877_v17 = vpop.f32.mrb[3].mxu1 }
 0x6c8   :  { %v878_v19 = vadd.f32 %v993_v14, %v877_v17 }
 0x6c9   :  { %v905_v20 = vcombine.high %v883_v16, %v883_v16  ;;  %v912_v21 = vrot.slane %v883_v16, %v1517_v18  ;;  %998 = vst.sshfl [vmem:[#allocation13 + $0x8] sm:$0x3 pattern:$0x76325410] %v883_v16 }
 0x6ca   :  { %v888_v22 = vcombine.high %v878_v19, %v878_v19  ;;  %v895_v23 = vrot.slane %v878_v19, %v1517_v18  ;;  %996 = vst.sshfl [vmem:[#allocation13] sm:$0x3 pattern:$0x76325410] %v878_v19 }
 0x6cb   :  { %v919_v24 = vrot.slane %v905_v20, %v1517_v18  ;;  %v920_v25 = vcombine.high %v912_v21, %v912_v21  ;;  %999 = vst.sshfl [vmem:[#allocation13 + $0xc] sm:$0x3 pattern:$0x76325410] %v905_v20 }
 0x6cc   :  { %v902_v26 = vrot.slane %v888_v22, %v1517_v18  ;;  %v903_v27 = vcombine.high %v895_v23, %v895_v23  ;;  %997 = vst.sshfl [vmem:[#allocation13 + $0x4] sm:$0x3 pattern:$0x76325410] %v888_v22 }
 0x6cd   :  { %v921_v28 = vcombine.high %v919_v24, %v919_v24  ;;  %935 = vst [vmem:[#allocation13 + $0xa] sm:$0x3] %v920_v25 }
 0x6ce   :  { %v904_v29 = vcombine.high %v902_v26, %v902_v26  ;;  %931 = vst [vmem:[#allocation13 + $0x2] sm:$0x3] %v903_v27 }
 0x6cf   :  { %937 = vst [vmem:[#allocation13 + $0xe] sm:$0x3] %v921_v28 }
 0x6d0   :  { %933 = vst [vmem:[#allocation13 + $0x6] sm:$0x3] %v904_v29 }
 0x6d1   :  { %1294 = shalt.err (!%p1291_p3)
}
 0x6d2   :  { %s1295_s21 = scalar_lea.hbm %s1656_s11, 256 }
 0x6d3   :  { %p1296_p4 = scmp.ne.s32.totalorder %s1656_s11, %s1295_s21  ;;  %p1299_p5 = scmp.lt.u32.totalorder %s1295_s21, %s1656_s11 }
 0x6d5   :  { %p1301_p6 = pnand %p1299_p5, %p1296_p4 }
 0x6d7   :  { %1304 = shalt.err (!%p1301_p6)
}
 0x6d8   :  { %949 = dma.vmem_to_hbm [thread:$0]  %s944_s19, 256, %s1656_s11, [#allocation6], %s1339_s29, %s1339_s29, %s1340_s30  }
 0x6d9   :  { %1323 = dma.done.wait [#allocation6], 256  }
 0x6da   :  { %1324 = vsyncadd [#allocation6], 4294967040 }
 0x6db   :  { %953 = vsyncpa [#allocation5], 1 }
 0x6dc   :  { %954 = vsyncpa [#allocation8], 1 }
 0x6dd   :  { %955 = vsyncpa [#allocation11], 1 }
 0x6de   :  { %956 = vsyncpa [#allocation6], 1 }

</bundles_post_ra>
